<compile_context>
chip_gen: v6e
topology: v6e:2x2x1
jax: 0.10.0
libtpu: 0.0.40
codegen_flags: <defaults>
</compile_context>

<pallas_src>
import functools

import jax
import jax.numpy as jnp
from jax.experimental import pallas as pl
from jax.experimental.pallas import tpu as pltpu


LANES = 128                    # padded feature / lane width
W_ROWS = 128                   # padded contraction dim of every weight block
B_ROWS = 8                     # sublane-aligned rows reserved for each bias
ROWS_PER_LAYER = W_ROWS + B_ROWS   # 136 rows per layer in the packed slab


def _round_up(x, m):
    return ((x + m - 1) // m) * m


def _net_kernel(x_ref, p_ref, out_ref, *, num_layers, d_in0):
    """Fused MLP forward on one (TB, d_in0) activation tile.

    p_ref is the packed parameter slab, resident in VMEM across grid steps:
      layer i occupies rows [i*136, i*136+136):
        rows [0:128)  -> weight, zero-padded to (128, 128)
        row  128      -> bias, zero-padded to 128 lanes
    """
    # Layer 0: x is (TB, d_in0); only the first d_in0 weight rows contribute.
    h = x_ref[...]                                      # (TB, d_in0) f32
    w = p_ref[pl.ds(0, d_in0), :]                       # (d_in0, 128)
    b = p_ref[pl.ds(W_ROWS, 1), :]                      # (1, 128)
    h = jnp.dot(h, w, preferred_element_type=jnp.float32) + b
    if num_layers > 1:
        h = jnp.maximum(h, 0.0)

    # Remaining layers: h is (TB, 128); weights are zero-padded to (128, 128),
    # so padding lanes stay exactly zero through the whole chain.
    for i in range(1, num_layers):
        base = i * ROWS_PER_LAYER
        w = p_ref[pl.ds(base, W_ROWS), :]               # (128, 128)
        b = p_ref[pl.ds(base + W_ROWS, 1), :]           # (1, 128)
        h = jnp.dot(h, w, preferred_element_type=jnp.float32) + b
        if i < num_layers - 1:                          # no ReLU after last Linear
            h = jnp.maximum(h, 0.0)

    out_ref[...] = h                                    # lane-dense (TB, 128) store


def pack_params(weights, biases):
    """Pack [W0,b0,...,W_{L-1},b_{L-1}] into one (L*136, 128) f32 slab."""
    blocks = []
    for w, b in zip(weights, biases):
        d_in, d_out = w.shape
        assert d_in <= W_ROWS and d_out <= LANES, "layer wider than padded tile"
        wb = jnp.zeros((W_ROWS, LANES), jnp.float32).at[:d_in, :d_out].set(w)
        bb = jnp.zeros((B_ROWS, LANES), jnp.float32).at[0, :d_out].set(
            jnp.reshape(b, (-1,)))
        blocks.append(wb)
        blocks.append(bb)
    return jnp.concatenate(blocks, axis=0)


def net_forward(x, weights, biases, *, block_b=256):
    """Run the fused Net forward as one pallas_call.

    x:        (B, D_in) float32
    weights:  list of (D_in_i, D_out_i) float32 (already transposed vs torch)
    biases:   list of (1, D_out_i) float32
    """
    B, d_in0 = x.shape
    num_layers = len(weights)
    out_dim = weights[-1].shape[1]

    packed = pack_params(weights, biases)               # one parameter DMA

    # Batch tile: large enough to amortize per-step overhead, sublane-aligned.
    tb = min(block_b, _round_up(B, 8))
    b_pad = _round_up(B, tb)
    if b_pad != B:
        x = jnp.pad(x, ((0, b_pad - B), (0, 0)))
    nb = b_pad // tb

    kernel = functools.partial(_net_kernel, num_layers=num_layers, d_in0=d_in0)

    flops = 2 * b_pad * sum(w.shape[0] * w.shape[1] for w in weights)
    bytes_accessed = x.size * 4 + packed.size * 4 + b_pad * LANES * 4

    out = pl.pallas_call(
        kernel,
        out_shape=jax.ShapeDtypeStruct((b_pad, LANES), jnp.float32),
        grid=(nb,),
        in_specs=[
            # Activations: one tile per grid step, double-buffer pipelined.
            pl.BlockSpec((tb, d_in0), lambda i: (i, 0)),
            # Packed params: constant block index -> fetched once, VMEM-resident.
            pl.BlockSpec(packed.shape, lambda i: (0, 0)),
        ],
        # Lane-dense output slab (multiple of 128) -> unmasked stores.
        out_specs=pl.BlockSpec((tb, LANES), lambda i: (i, 0)),
        compiler_params=pltpu.CompilerParams(
            # v7x: shard batch tiles across both TensorCores; harmless on v5e/v6e.
            dimension_semantics=("parallel",),
        ),
        cost_estimate=pl.CostEstimate(
            flops=flops, transcendentals=0, bytes_accessed=bytes_accessed),
    )(x, packed)

    return out[:B, :out_dim]


def make_params(key, layer_dims):
    """Deterministic parameter init (stand-in for basic_init / uniform_init)."""
    weights, biases = [], []
    for i, (d_in, d_out) in enumerate(zip(layer_dims[:-1], layer_dims[1:])):
        key, kw, kb = jax.random.split(key, 3)
        scale = 1.0 / jnp.sqrt(jnp.float32(d_in))
        if i == len(layer_dims) - 2:
            # net_last_init_func=uniform_init -> small uniform on last layer
            w = jax.random.uniform(kw, (d_in, d_out), jnp.float32, -3e-3, 3e-3)
            b = jax.random.uniform(kb, (1, d_out), jnp.float32, -3e-3, 3e-3)
        else:
            w = jax.random.uniform(kw, (d_in, d_out), jnp.float32, -scale, scale)
            b = jax.random.uniform(kb, (1, d_out), jnp.float32, -scale, scale)
        weights.append(w)
        biases.append(b)
    return weights, biases


def reference_forward(x, weights, biases):
    h = x
    for i, (w, b) in enumerate(zip(weights, biases)):
        h = h @ w + b
        if i < len(weights) - 1:
            h = jnp.maximum(h, 0.0)
    return h


if __name__ == "__main__":
    # Architecture: input 32 -> base [32, 32] -> append [32] -> output 16
    B = 8
    layer_dims = [32, 32, 32, 32, 16]

    key = jax.random.PRNGKey(0)
    key, kx = jax.random.split(key)
    x = jax.random.normal(kx, (B, layer_dims[0]), jnp.float32)

    weights, biases = make_params(key, layer_dims)

    out = net_forward(x, weights, biases)
    out = jax.block_until_ready(out)

    ref = reference_forward(x, weights, biases)
    assert out.shape == (B, layer_dims[-1])
    assert jnp.allclose(out, ref, atol=1e-5, rtol=1e-5), "mismatch vs reference"

    print("KERNEL_OK")
</pallas_src>

<mosaic_0001>
module attributes {stable_mosaic.version = 11 : i64} {
  func.func @_net_kernel(%arg0: i32, %arg1: memref<8x32xf32, #tpu.memory_space<vmem>>, %arg2: memref<544x128xf32, #tpu.memory_space<vmem>>, %arg3: memref<8x128xf32, #tpu.memory_space<vmem>>) attributes {dimension_semantics = [#tpu.dimension_semantics<parallel>], iteration_bounds = array<i64: 1>, scalar_prefetch = 0 : i64, scratch_operands = 0 : i64, tpu.core_type = #tpu.core_type<tc>, window_params = [{transform_indices = @transform_0, window_bounds = array<i64: 8, 32>}, {pipeline_mode = #tpu.pipeline_mode<synchronous>, transform_indices = @transform_1, window_bounds = array<i64: 544, 128>}, {transform_indices = @transform_2, window_bounds = array<i64: 8, 128>}]} {
    %c0 = arith.constant 0 : index
    %c0_0 = arith.constant 0 : index
    %0 = vector.load %arg1[%c0, %c0_0] : memref<8x32xf32, #tpu.memory_space<vmem>>, vector<8x32xf32>
    %c0_1 = arith.constant 0 : index
    %c0_2 = arith.constant 0 : index
    %1 = vector.load %arg2[%c0_1, %c0_2] : memref<544x128xf32, #tpu.memory_space<vmem>>, vector<32x128xf32>
    %c128 = arith.constant 128 : index
    %c0_3 = arith.constant 0 : index
    %2 = vector.load %arg2[%c128, %c0_3] : memref<544x128xf32, #tpu.memory_space<vmem>>, vector<1x128xf32>
    %cst = arith.constant dense<0.000000e+00> : vector<8x128xf32>
    %3 = tpu.matmul %0, %1, %cst {dimension_numbers = #tpu.dot_dimension_numbers<[1], [0], [0], [1], [0, 0, 1, 1], [], []>} : vector<8x32xf32>, vector<32x128xf32>, vector<8x128xf32> -> vector<8x128xf32>
    %4 = vector.broadcast %2 : vector<1x128xf32> to vector<8x128xf32>
    %5 = arith.addf %3, %4 : vector<8x128xf32>
    %cst_4 = arith.constant 0.000000e+00 : f32
    %6 = vector.broadcast %cst_4 : f32 to vector<8x128xf32>
    %7 = arith.maximumf %5, %6 : vector<8x128xf32>
    %c136 = arith.constant 136 : index
    %c0_5 = arith.constant 0 : index
    %8 = vector.load %arg2[%c136, %c0_5] : memref<544x128xf32, #tpu.memory_space<vmem>>, vector<128x128xf32>
    %c264 = arith.constant 264 : index
    %c0_6 = arith.constant 0 : index
    %9 = vector.load %arg2[%c264, %c0_6] : memref<544x128xf32, #tpu.memory_space<vmem>>, vector<1x128xf32>
    %cst_7 = arith.constant dense<0.000000e+00> : vector<8x128xf32>
    %10 = tpu.matmul %7, %8, %cst_7 {dimension_numbers = #tpu.dot_dimension_numbers<[1], [0], [0], [1], [0, 0, 1, 1], [], []>} : vector<8x128xf32>, vector<128x128xf32>, vector<8x128xf32> -> vector<8x128xf32>
    %11 = vector.broadcast %9 : vector<1x128xf32> to vector<8x128xf32>
    %12 = arith.addf %10, %11 : vector<8x128xf32>
    %cst_8 = arith.constant 0.000000e+00 : f32
    %13 = vector.broadcast %cst_8 : f32 to vector<8x128xf32>
    %14 = arith.maximumf %12, %13 : vector<8x128xf32>
    %c272 = arith.constant 272 : index
    %c0_9 = arith.constant 0 : index
    %15 = vector.load %arg2[%c272, %c0_9] : memref<544x128xf32, #tpu.memory_space<vmem>>, vector<128x128xf32>
    %c400 = arith.constant 400 : index
    %c0_10 = arith.constant 0 : index
    %16 = vector.load %arg2[%c400, %c0_10] : memref<544x128xf32, #tpu.memory_space<vmem>>, vector<1x128xf32>
    %cst_11 = arith.constant dense<0.000000e+00> : vector<8x128xf32>
    %17 = tpu.matmul %14, %15, %cst_11 {dimension_numbers = #tpu.dot_dimension_numbers<[1], [0], [0], [1], [0, 0, 1, 1], [], []>} : vector<8x128xf32>, vector<128x128xf32>, vector<8x128xf32> -> vector<8x128xf32>
    %18 = vector.broadcast %16 : vector<1x128xf32> to vector<8x128xf32>
    %19 = arith.addf %17, %18 : vector<8x128xf32>
    %cst_12 = arith.constant 0.000000e+00 : f32
    %20 = vector.broadcast %cst_12 : f32 to vector<8x128xf32>
    %21 = arith.maximumf %19, %20 : vector<8x128xf32>
    %c408 = arith.constant 408 : index
    %c0_13 = arith.constant 0 : index
    %22 = vector.load %arg2[%c408, %c0_13] : memref<544x128xf32, #tpu.memory_space<vmem>>, vector<128x128xf32>
    %c536 = arith.constant 536 : index
    %c0_14 = arith.constant 0 : index
    %23 = vector.load %arg2[%c536, %c0_14] : memref<544x128xf32, #tpu.memory_space<vmem>>, vector<1x128xf32>
    %cst_15 = arith.constant dense<0.000000e+00> : vector<8x128xf32>
    %24 = tpu.matmul %21, %22, %cst_15 {dimension_numbers = #tpu.dot_dimension_numbers<[1], [0], [0], [1], [0, 0, 1, 1], [], []>} : vector<8x128xf32>, vector<128x128xf32>, vector<8x128xf32> -> vector<8x128xf32>
    %25 = vector.broadcast %23 : vector<1x128xf32> to vector<8x128xf32>
    %26 = arith.addf %24, %25 : vector<8x128xf32>
    %c0_16 = arith.constant 0 : index
    %c0_17 = arith.constant 0 : index
    %27 = vector.load %arg3[%c0_16, %c0_17] : memref<8x128xf32, #tpu.memory_space<vmem>>, vector<8x128xf32>
    tpu.vector_store %arg3[%c0_16, %c0_17], %26 {strides = array<i32>} : memref<8x128xf32, #tpu.memory_space<vmem>>, vector<8x128xf32>,
    return
  }
  func.func @transform_0(%arg0: i32) -> (i32, i32) {
    %c0_i32 = arith.constant 0 : i32
    %c0_i32_0 = arith.constant 0 : i32
    return %arg0, %c0_i32 : i32, i32
  }
  func.func @transform_1(%arg0: i32) -> (i32, i32) {
    %c0_i32 = arith.constant 0 : i32
    %c0_i32_0 = arith.constant 0 : i32
    %c0_i32_1 = arith.constant 0 : i32
    return %c0_i32, %c0_i32_0 : i32, i32
  }
  func.func @transform_2(%arg0: i32) -> (i32, i32) {
    %c0_i32 = arith.constant 0 : i32
    %c0_i32_0 = arith.constant 0 : i32
    return %arg0, %c0_i32 : i32, i32
  }
}

</mosaic_0001>

<bundles_post_ra>
// kernel: tpu_custom_call.1
= control target key start
LH: loop header
LB: loop body
LE: loop exit
PB: predicated region body
PF: predicated region fallthrough
CT: control target
= control target key end

     0   :  { %7 = vsyncpa [#allocation3], 0  ;;  %s756_s0 = inlined_call_operand.hbm [shape: f32[8,32], index: 0, kind: input, shape index: {}]   ;;  %s757_s1 = inlined_call_operand.hbm [shape: f32[544,128], index: 1, kind: input, shape index: {}]   ;;  %s758_s2 = inlined_call_operand.hbm [shape: f32[8,128], index: 2, kind: output, shape index: {}]  }
   0x1   :  { %8 = vsyncpa [#allocation6], 0 }
   0x2   :  { %9 = vsyncpa [#allocation4], 0  ;;  %s665_s9 = smov [#allocation2]   ;;  %s666_s11 = smov [#allocation5]  }
   0x3   :  { %s16_s10 = sshll.u32 %s665_s9, 4  ;;  %s25_s12 = sshll.u32 %s666_s11, 4  ;;  %s17_s10 = int_to_ptr.vmem [resolvable:$true] %s16_s10  ;;  %s26_s12 = int_to_ptr.vmem [resolvable:$true] %s25_s12 }
   0x4   :  { %s607_s13 = scalar_lea.vmem %s17_s10, 128  ;;  %p612_p1 = scmp.lt.s32.totalorder %s17_s10, %s17_s10 }
   0x5   :  { %p608_p0 = scmp.ne.s32.totalorder %s17_s10, %s607_s13  ;;  %p613_p2 = scmp.lt.s32.totalorder %s607_s13, %s607_s13 }
   0x7   :  { %p614_p3 = por %p613_p2, %p612_p1 }
   0x9   :  { %p615_p4 = pnand %p614_p3, %p608_p0 }
   0xb   :  { %618 = shalt.err (!%p615_p4)
}
   0xc   :  { %19 = dma.hbm_to_vmem [thread:$0]  %s756_s0, 128, %s17_s10, [#allocation3]  }
   0xd   :  { %s627_s16 = scalar_lea.vmem %s26_s12, 8704  ;;  %p632_p6 = scmp.lt.s32.totalorder %s26_s12, %s26_s12 }
   0xe   :  { %p628_p5 = scmp.ne.s32.totalorder %s26_s12, %s627_s16  ;;  %p633_p7 = scmp.lt.s32.totalorder %s627_s16, %s627_s16 }
  0x10   :  { %p634_p8 = por %p633_p7, %p632_p6 }
  0x12   :  { %p635_p9 = pnand %p634_p8, %p628_p5 }
  0x14   :  { %638 = shalt.err (!%p635_p9)
}
  0x15   :  { %s667_s17 = smov 128   ;;  %s668_s18 = smov 8  }
  0x16   :  { %31 = dma.hbm_to_vmem [thread:$0]  %s757_s1, 8704, %s26_s12, [#allocation6], %s667_s17, %s667_s17, %s668_s18  }
  0x17   :  { %659 = dma.done.wait [#allocation3], 128  }
  0x18   :  { %660 = vsyncadd [#allocation3], 4294967168 }
  0x19   :  { %661 = dma.done.wait [#allocation6], 8704  }
  0x1a   :  { %662 = vsyncadd [#allocation6], 4294958592  ;;  %v669_v0 = vmov 0.0   ;;  %vm670_vm0 = vmmov 0   ;;  %v42_v1 = vld [vmem:[#allocation5 + $0x18] sm:$0xff]  ;;  %v41_v2 = vld [vmem:[#allocation5 + $0x10] sm:$0xff] }
  0x1b   :  { %476 = vmatprep.subr.mxu0 %v669_v0  ;;  %484 = vmatprep.mubr.msk.f32.mxu0 %vm670_vm0, %v669_v0  ;;  %v138_v3 = vld [vmem:[#allocation5 + $0x100] sm:$0xff]  ;;  %v40_v4 = vld [vmem:[#allocation5 + $0x8] sm:$0xff]  ;;  %v137_v5 = vld [vmem:[#allocation5 + $0xf8] sm:$0xff]  ;;  %vm48_vm1 = vcmask 261120   ;;  %s671_s0 = smov [#allocation7]  }
  0x1c   :  { %487 = vmatprep.subr.mxu1 %v669_v0  ;;  %519 = vmatprep.mubr.msk.f32.mxu1 %vm670_vm0, %v669_v0  ;;  %v136_v6 = vld [vmem:[#allocation5 + $0xf0] sm:$0xff]  ;;  %v39_v7 = vld [vmem:[#allocation5] sm:$0xff]  ;;  %v38_v8 = vld [vmem:[#allocation2] sm:$0xff]  ;;  %s405_s1 = sshll.u32 %s671_s0, 4  ;;  %s406_s1 = int_to_ptr.vmem [resolvable:$true] %s405_s1 }
  0x1d   :  { %477 = vmatpush3.msra.mxu0 %v42_v1  ;;  %488 = vmatpush3.msra.mxu1 %v138_v3  ;;  %v135_v9 = vld [vmem:[#allocation5 + $0xe8] sm:$0xff]  ;;  %v134_v10 = vld [vmem:[#allocation5 + $0xe0] sm:$0xff]  ;;  %v133_v11 = vld [vmem:[#allocation5 + $0xd8] sm:$0xff]  ;;  %s639_s21 = scalar_lea.vmem %s406_s1, 128  ;;  %p644_p11 = scmp.lt.s32.totalorder %s406_s1, %s406_s1 }
  0x1e   :  { %478 = vmatprep.subr.mxu0 %v669_v0  ;;  %489 = vmatprep.subr.mxu1 %v669_v0  ;;  %v132_v12 = vld [vmem:[#allocation5 + $0xd0] sm:$0xff]  ;;  %v131_v13 = vld [vmem:[#allocation5 + $0xc8] sm:$0xff]  ;;  %v130_v14 = vld [vmem:[#allocation5 + $0xc0] sm:$0xff]  ;;  %p640_p10 = scmp.ne.s32.totalorder %s406_s1, %s639_s21  ;;  %p645_p12 = scmp.lt.s32.totalorder %s639_s21, %s639_s21 }
  0x1f   :  { %479 = vmatpush3.msra.mxu0 %v41_v2  ;;  %490 = vmatpush3.msra.mxu1 %v137_v5  ;;  %v129_v15 = vld [vmem:[#allocation5 + $0xb8] sm:$0xff]  ;;  %v128_v16 = vld [vmem:[#allocation5 + $0xb0] sm:$0xff]  ;;  %v127_v17 = vld [vmem:[#allocation5 + $0xa8] sm:$0xff] }
  0x20   :  { %480 = vmatprep.subr.mxu0 %v669_v0  ;;  %491 = vmatprep.subr.mxu1 %v669_v0  ;;  %v126_v18 = vld [vmem:[#allocation5 + $0xa0] sm:$0xff]  ;;  %v125_v19 = vld [vmem:[#allocation5 + $0x98] sm:$0xff]  ;;  %v124_v20 = vld [vmem:[#allocation5 + $0x90] sm:$0xff]  ;;  %p646_p13 = por %p645_p12, %p644_p11 }
  0x21   :  { %481 = vmatpush3.msra.mxu0 %v40_v4  ;;  %492 = vmatpush3.msra.mxu1 %v136_v6  ;;  %v123_v21 = vld [vmem:[#allocation5 + $0x88] sm:$0xff]  ;;  %v229_v23 = vld [vmem:[#allocation5 + $0x180] sm:$0xff]  ;;  %v228_v24 = vld [vmem:[#allocation5 + $0x178] sm:$0xff] }
  0x22   :  { %482 = vmatprep.subr.mxu0 %v669_v0  ;;  %493 = vmatprep.subr.mxu1 %v669_v0  ;;  %v230_v22 = vld [vmem:[#allocation5 + $0x188] sm:$0xff]  ;;  %v227_v25 = vld [vmem:[#allocation5 + $0x170] sm:$0xff]  ;;  %v225_v27 = vld [vmem:[#allocation5 + $0x160] sm:$0xff]  ;;  %p647_p0 = pnand %p646_p13, %p640_p10 }
  0x23   :  { %483 = vmatpush3.msra.mxu0 %v39_v7  ;;  %494 = vmatpush3.msra.mxu1 %v135_v9  ;;  %v226_v26 = vld [vmem:[#allocation5 + $0x168] sm:$0xff]  ;;  %v224_v28 = vld [vmem:[#allocation5 + $0x158] sm:$0xff]  ;;  %v223_v29 = vld [vmem:[#allocation5 + $0x150] sm:$0xff] }
  0x24   :  { %485 = vmatmul.mubr.msk.f32.vlgmr.msra.gmra.mxu0 %vm48_vm1, %v38_v8  ;;  %495 = vmatprep.subr.mxu1 %v669_v0  ;;  %v222_v30 = vld [vmem:[#allocation5 + $0x148] sm:$0xff]  ;;  %v221_v31 = vld [vmem:[#allocation5 + $0x140] sm:$0xff]  ;;  %v220_v32 = vld [vmem:[#allocation5 + $0x138] sm:$0xff] }
  0x25   :  { %522 = vmatprep.subr.mxu0 %v669_v0  ;;  %496 = vmatpush3.msra.mxu1 %v134_v10  ;;  %v219_v33 = vld [vmem:[#allocation5 + $0x130] sm:$0xff]  ;;  %v218_v34 = vld [vmem:[#allocation5 + $0x128] sm:$0xff]  ;;  %v415_v35 = vld [vmem:[#allocation5 + $0x80] ss:$0 sm:$0xff] }
  0x26   :  { %554 = vmatprep.mubr.msk.f32.mxu0 %vm670_vm0, %v669_v0  ;;  %497 = vmatprep.subr.mxu1 %v669_v0  ;;  %v217_v40 = vld [vmem:[#allocation5 + $0x120] sm:$0xff]  ;;  %v216_v41 = vld [vmem:[#allocation5 + $0x118] sm:$0xff]  ;;  %v215_v42 = vld [vmem:[#allocation5 + $0x110] sm:$0xff] }
  0x27   :  { %498 = vmatpush3.msra.mxu1 %v133_v11  ;;  %523 = vmatpush3.msra.mxu0 %v230_v22  ;;  %v322_v43 = vld [vmem:[#allocation5 + $0x210] sm:$0xff]  ;;  %v321_v44 = vld [vmem:[#allocation5 + $0x208] sm:$0xff]  ;;  %v320_v45 = vld [vmem:[#allocation5 + $0x200] sm:$0xff] }
  0x28   :  { %499 = vmatprep.subr.mxu1 %v669_v0  ;;  %524 = vmatprep.subr.mxu0 %v669_v0  ;;  %v319_v46 = vld [vmem:[#allocation5 + $0x1f8] sm:$0xff]  ;;  %v318_v47 = vld [vmem:[#allocation5 + $0x1f0] sm:$0xff]  ;;  %v317_v48 = vld [vmem:[#allocation5 + $0x1e8] sm:$0xff] }
  0x29   :  { %500 = vmatpush3.msra.mxu1 %v132_v12  ;;  %525 = vmatpush3.msra.mxu0 %v229_v23  ;;  %v316_v49 = vld [vmem:[#allocation5 + $0x1e0] sm:$0xff]  ;;  %v315_v50 = vld [vmem:[#allocation5 + $0x1d8] sm:$0xff]  ;;  %v314_v51 = vld [vmem:[#allocation5 + $0x1d0] sm:$0xff] }
  0x2a   :  { %501 = vmatprep.subr.mxu1 %v669_v0  ;;  %526 = vmatprep.subr.mxu0 %v669_v0  ;;  %v313_v52 = vld [vmem:[#allocation5 + $0x1c8] sm:$0xff]  ;;  %v312_v53 = vld [vmem:[#allocation5 + $0x1c0] sm:$0xff]  ;;  %v311_v54 = vld [vmem:[#allocation5 + $0x1b8] sm:$0xff] }
  0x2b   :  { %502 = vmatpush3.msra.mxu1 %v131_v13  ;;  %527 = vmatpush3.msra.mxu0 %v228_v24  ;;  %v310_v55 = vld [vmem:[#allocation5 + $0x1b0] sm:$0xff]  ;;  %v417_v56 = vld [vmem:[#allocation5 + $0x108] ss:$0 sm:$0xff]  ;;  %v308_v62 = vld [vmem:[#allocation5 + $0x1a0] sm:$0xff] }
  0x2c   :  { %503 = vmatprep.subr.mxu1 %v669_v0  ;;  %528 = vmatprep.subr.mxu0 %v669_v0  ;;  %v309_v61 = vld [vmem:[#allocation5 + $0x1a8] sm:$0xff]  ;;  %v307_v63 = vld [vmem:[#allocation5 + $0x198] sm:$0xff]  ;;  %v418_v1 = vld [vmem:[#allocation5 + $0x190] ss:$0 sm:$0xff] }
  0x2d   :  { %504 = vmatpush3.msra.mxu1 %v130_v14  ;;  %529 = vmatpush3.msra.mxu0 %v227_v25  ;;  %v419_v6 = vld [vmem:[#allocation5 + $0x218] ss:$0 sm:$0xff] }
  0x2e   :  { %505 = vmatprep.subr.mxu1 %v669_v0  ;;  %530 = vmatprep.subr.mxu0 %v669_v0 }
  0x2f   :  { %506 = vmatpush3.msra.mxu1 %v129_v15  ;;  %531 = vmatpush3.msra.mxu0 %v226_v26 }
  0x30   :  { %507 = vmatprep.subr.mxu1 %v669_v0  ;;  %532 = vmatprep.subr.mxu0 %v669_v0 }
  0x31   :  { %508 = vmatpush3.msra.mxu1 %v128_v16  ;;  %533 = vmatpush3.msra.mxu0 %v225_v27 }
  0x32   :  { %509 = vmatprep.subr.mxu1 %v669_v0  ;;  %534 = vmatprep.subr.mxu0 %v669_v0 }
  0x33   :  { %510 = vmatpush3.msra.mxu1 %v127_v17  ;;  %535 = vmatpush3.msra.mxu0 %v224_v28 }
  0x34   :  { %511 = vmatprep.subr.mxu1 %v669_v0  ;;  %536 = vmatprep.subr.mxu0 %v669_v0 }
  0x35   :  { %512 = vmatpush3.msra.mxu1 %v126_v18  ;;  %537 = vmatpush3.msra.mxu0 %v223_v29 }
  0x36   :  { %513 = vmatprep.subr.mxu1 %v669_v0  ;;  %538 = vmatprep.subr.mxu0 %v669_v0 }
  0x37   :  { %514 = vmatpush3.msra.mxu1 %v125_v19  ;;  %539 = vmatpush3.msra.mxu0 %v222_v30 }
  0x38   :  { %515 = vmatprep.subr.mxu1 %v669_v0  ;;  %540 = vmatprep.subr.mxu0 %v669_v0 }
  0x39   :  { %516 = vmatpush3.msra.mxu1 %v124_v20  ;;  %541 = vmatpush3.msra.mxu0 %v221_v31 }
  0x3a   :  { %517 = vmatprep.subr.mxu1 %v669_v0  ;;  %542 = vmatprep.subr.mxu0 %v669_v0 }
  0x3b   :  { %518 = vmatpush3.msra.mxu1 %v123_v21  ;;  %543 = vmatpush3.msra.mxu0 %v220_v32 }
  0x3c   :  { %557 = vmatprep.subr.mxu1 %v669_v0  ;;  %544 = vmatprep.subr.mxu0 %v669_v0 }
  0x3d   :  { %545 = vmatpush3.msra.mxu0 %v219_v33 }
  0x3e   :  { %546 = vmatprep.subr.mxu0 %v669_v0 }
  0x3f   :  { %547 = vmatpush3.msra.mxu0 %v218_v34 }
  0x40   :  { %548 = vmatprep.subr.mxu0 %v669_v0 }
  0x41   :  { %549 = vmatpush3.msra.mxu0 %v217_v40 }
  0x42   :  { %550 = vmatprep.subr.mxu0 %v669_v0 }
  0x43   :  { %551 = vmatpush3.msra.mxu0 %v216_v41 }
  0x44   :  { %552 = vmatprep.subr.mxu0 %v669_v0 }
  0x45   :  { %553 = vmatpush3.msra.mxu0 %v215_v42 }
  0xe4   :  { %v118_v36 = vpop.f32.mrf.mxu0 }
  0xe5   :  { %v119_v37 = vadd.f32 %v415_v35, %v118_v36 }
  0xe6   :  { %v486_v38 = vpop.f32.mrf.mxu0 }
  0xe7   :  { %v122_v39 = vmax.f32 %v119_v37, 0.0 }
  0xe9   :  { %520 = vmatmul.mubr.f32.vlgmr.msra.gmra.mxu1 %v122_v39 }
  0xea   :  { %589 = vmatprep.mubr.msk.f32.mxu1 %vm670_vm0, %v669_v0  ;;  %558 = vmatpush3.msra.mxu1 %v322_v43 }
  0xeb   :  { %559 = vmatprep.subr.mxu1 %v669_v0 }
  0xec   :  { %560 = vmatpush3.msra.mxu1 %v321_v44 }
  0xed   :  { %561 = vmatprep.subr.mxu1 %v669_v0 }
  0xee   :  { %562 = vmatpush3.msra.mxu1 %v320_v45 }
  0xef   :  { %563 = vmatprep.subr.mxu1 %v669_v0 }
  0xf0   :  { %564 = vmatpush3.msra.mxu1 %v319_v46 }
  0xf1   :  { %565 = vmatprep.subr.mxu1 %v669_v0 }
  0xf2   :  { %566 = vmatpush3.msra.mxu1 %v318_v47 }
  0xf3   :  { %567 = vmatprep.subr.mxu1 %v669_v0 }
  0xf4   :  { %568 = vmatpush3.msra.mxu1 %v317_v48 }
  0xf5   :  { %569 = vmatprep.subr.mxu1 %v669_v0 }
  0xf6   :  { %570 = vmatpush3.msra.mxu1 %v316_v49 }
  0xf7   :  { %571 = vmatprep.subr.mxu1 %v669_v0 }
  0xf8   :  { %572 = vmatpush3.msra.mxu1 %v315_v50 }
  0xf9   :  { %573 = vmatprep.subr.mxu1 %v669_v0 }
  0xfa   :  { %574 = vmatpush3.msra.mxu1 %v314_v51 }
  0xfb   :  { %575 = vmatprep.subr.mxu1 %v669_v0 }
  0xfc   :  { %576 = vmatpush3.msra.mxu1 %v313_v52 }
  0xfd   :  { %577 = vmatprep.subr.mxu1 %v669_v0 }
  0xfe   :  { %578 = vmatpush3.msra.mxu1 %v312_v53 }
  0xff   :  { %579 = vmatprep.subr.mxu1 %v669_v0 }
 0x100   :  { %580 = vmatpush3.msra.mxu1 %v311_v54 }
 0x101   :  { %581 = vmatprep.subr.mxu1 %v669_v0 }
 0x102   :  { %582 = vmatpush3.msra.mxu1 %v310_v55 }
 0x103   :  { %583 = vmatprep.subr.mxu1 %v669_v0 }
 0x104   :  { %584 = vmatpush3.msra.mxu1 %v309_v61 }
 0x105   :  { %585 = vmatprep.subr.mxu1 %v669_v0 }
 0x106   :  { %586 = vmatpush3.msra.mxu1 %v308_v62 }
 0x107   :  { %587 = vmatprep.subr.mxu1 %v669_v0 }
 0x108   :  { %588 = vmatpush3.msra.mxu1 %v307_v63 }
 0x1a9   :  { %v210_v57 = vpop.f32.mrf.mxu1 }
 0x1aa   :  { %v211_v58 = vadd.f32 %v417_v56, %v210_v57 }
 0x1ab   :  { %v521_v59 = vpop.f32.mrf.mxu1 }
 0x1ac   :  { %v214_v60 = vmax.f32 %v211_v58, 0.0 }
 0x1ae   :  { %555 = vmatmul.mubr.f32.vlgmr.msra.gmra.mxu0 %v214_v60 }
 0x26e   :  { %v302_v2 = vpop.f32.mrf.mxu0 }
 0x26f   :  { %v303_v3 = vadd.f32 %v418_v1, %v302_v2 }
 0x270   :  { %v556_v4 = vpop.f32.mrf.mxu0 }
 0x271   :  { %v306_v5 = vmax.f32 %v303_v3, 0.0 }
 0x273   :  { %590 = vmatmul.mubr.f32.vlgmr.msra.gmra.mxu1 %v306_v5 }
 0x333   :  { %v394_v7 = vpop.f32.mrf.mxu1 }
 0x334   :  { %v395_v8 = vadd.f32 %v419_v6, %v394_v7 }
 0x335   :  { %v591_v9 = vpop.f32.mrf.mxu1 }
 0x336   :  { %398 = vst [vmem:[#allocation7] sm:$0xff] %v395_v8 }
 0x337   :  { %650 = shalt.err (!%p647_p0)
}
 0x338   :  { %408 = dma.vmem_to_hbm [thread:$0]  %s406_s1, 128, %s758_s2, [#allocation4]  }
 0x339   :  { %663 = dma.done.wait [#allocation4], 128  }
 0x33a   :  { %664 = vsyncadd [#allocation4], 4294967168 }
 0x33b   :  { %412 = vsyncpa [#allocation3], 1 }
 0x33c   :  { %413 = vsyncpa [#allocation6], 1 }
 0x33d   :  { %414 = vsyncpa [#allocation4], 1 }

</bundles_post_ra>
